<compile_context>
chip_gen: v6e
topology: v6e:2x2x1
jax: 0.10.0
libtpu: 0.0.40
codegen_flags: <defaults>
</compile_context>

<pallas_src>
import jax
import jax.numpy as jnp
from jax.experimental import pallas as pl
from jax.experimental.pallas import tpu as pltpu


_LANES = 128
_ACC_ROWS = 8  # rows 0..4 used: [pu3_num, sum(prior[y]*p[y]), ce_num, nP, nU]


def _make_kernel(n_rows, num_class, sub, tile_n, tiles_per_core):
    """Kernel closure over trace-time constants (shapes / row count)."""
    C = num_class

    def kernel(logits_ref, lab_ref, idx_ref, prior_ref, out_ref):
        core = pl.program_id(0)
        t = pl.program_id(1)

        @pl.when(t == 0)
        def _():
            out_ref[...] = jnp.zeros_like(out_ref)

        # Global row index of every element of this (sub, 128) tile -> padding mask.
        base = (core * tiles_per_core + t) * tile_n
        sub_i = jax.lax.broadcasted_iota(jnp.int32, (sub, _LANES), 0)
        lane_i = jax.lax.broadcasted_iota(jnp.int32, (sub, _LANES), 1)
        row = base + sub_i * _LANES + lane_i
        valid = row < n_rows

        labels = lab_ref[...]                              # (sub, 128) int32
        is_pos = jnp.logical_and(valid, labels <= C - 1)
        is_unl = jnp.logical_and(valid, labels > C - 1)

        # Lane-dense class planes: rows on lanes, one (sub, 128) plane per class.
        planes = [logits_ref[c].astype(jnp.float32) for c in range(C)]

        # Stable softmax pieces, unrolled over the C planes (plain VPU adds/max).
        m = planes[0]
        for c in range(1, C):
            m = jnp.maximum(m, planes[c])
        es = [jnp.exp(planes[c] - m) for c in range(C)]
        s = es[0]
        for c in range(1, C):
            s = s + es[c]
        log_s = jnp.log(s)

        # pu3 rows: sum_c idx[c] * -log(1 - p_c) == sum_c idx[c]*(log s - log(s - e_c)).
        pu3_rows = jnp.zeros((sub, _LANES), jnp.float32)
        for c in range(C):
            pu3_rows = pu3_rows + idx_ref[c] * (log_s - jnp.log(s - es[c]))

        # Label-indexed gathers via C dense selects (no onehot matmul, no XLU).
        e_lab = jnp.zeros((sub, _LANES), jnp.float32)
        prior_lab = jnp.zeros((sub, _LANES), jnp.float32)
        logit_lab = jnp.zeros((sub, _LANES), jnp.float32)
        for c in range(C):
            sel = labels == c
            e_lab = jnp.where(sel, es[c], e_lab)
            prior_lab = jnp.where(sel, prior_ref[c], prior_lab)
            logit_lab = jnp.where(sel, planes[c], logit_lab)

        p_lab = e_lab / s
        ce_rows = (m + log_s) - logit_lab                  # logsumexp - logit[label]

        zero = jnp.zeros((sub, _LANES), jnp.float32)
        # where-masking (not multiply) so inf rows on the other class never make NaNs.
        pu3_v = jnp.where(is_unl, pu3_rows, zero)
        plab_v = jnp.where(is_pos, prior_lab * p_lab, zero)
        ce_v = jnp.where(is_pos, ce_rows, zero)
        np_v = jnp.where(is_pos, 1.0, 0.0)
        nu_v = jnp.where(is_unl, 1.0, 0.0)

        def _acc(q, v):
            out_ref[pl.ds(q, 1), :] += jnp.sum(v, axis=0, keepdims=True)

        _acc(0, pu3_v)
        _acc(1, plab_v)
        _acc(2, ce_v)
        _acc(3, np_v)
        _acc(4, nu_v)

    return kernel


def nnpu_loss(outputs, labels, priorlist, indexlist, kp, kn, *, puW, num_class,
              tile_n=None, num_cores=None):
    """JAX wrapper reproducing Test.forward (kn is unused, as in the reference)."""
    del kn
    N, C = outputs.shape
    assert C == num_class
    assert indexlist.shape == (C,) and priorlist.shape == (C,)

    if num_cores is None:
        # v5e / v6e: 1 TensorCore -> no extra grid axis.  v7x: 2 TCs -> shard rows.
        try:
            num_cores = max(1, min(2, int(getattr(jax.devices()[0], "num_cores", 1))))
        except Exception:
            num_cores = 1

    itemsize = outputs.dtype.itemsize
    if tile_n is None:
        # Live VMEM per row: C input planes (double-buffered) + int32 labels
        # (double-buffered) + ~(2C + 12) f32 temporaries.  8 MiB tile budget is
        # comfortably inside every generation's scoped VMEM (v7x: 64 MiB phys).
        bytes_per_row = 2 * C * itemsize + 8 + (2 * C + 12) * 4
        tile_n = (8 * 1024 * 1024) // bytes_per_row
        tile_n = min(tile_n, 32 * 1024)                  # big tiles amortize step cost
        tile_n = min(tile_n, pl.cdiv(N, 1024) * 1024)    # don't over-pad tiny batches
    tile_n = max(1024, (int(tile_n) // 1024) * 1024)     # sub multiple of 8 -> dense vregs
    sub = tile_n // _LANES

    tiles_total = pl.cdiv(N, tile_n)
    tiles_per_core = int(pl.cdiv(tiles_total, num_cores))
    padded_n = num_cores * tiles_per_core * tile_n

    # Lane-dense layout: one transposed pass in XLA, then every kernel op runs
    # at full lane utilization.  Logits stay in their native dtype in HBM.
    logits_t = jnp.transpose(outputs)                    # (C, N)
    if padded_n != N:
        logits_t = jnp.pad(logits_t, ((0, 0), (0, padded_n - N)))
    logits_3d = logits_t.reshape(C, padded_n // _LANES, _LANES)

    labels_p = jnp.pad(labels.astype(jnp.int32), (0, padded_n - N),
                       constant_values=C)                # value irrelevant, masked in-kernel
    labels_2d = labels_p.reshape(padded_n // _LANES, _LANES)

    idx_b = jnp.broadcast_to(indexlist.astype(jnp.float32)[:, None, None],
                             (C, 1, _LANES))
    prior_b = jnp.broadcast_to(priorlist.astype(jnp.float32)[:, None, None],
                               (C, 1, _LANES))

    kernel = _make_kernel(N, C, sub, tile_n, tiles_per_core)

    partials = pl.pallas_call(
        kernel,
        out_shape=jax.ShapeDtypeStruct((num_cores * _ACC_ROWS, _LANES), jnp.float32),
        grid_spec=pltpu.PrefetchScalarGridSpec(
            num_scalar_prefetch=0,
            grid=(num_cores, tiles_per_core),
            in_specs=[
                pl.BlockSpec((C, sub, _LANES),
                             lambda c, t: (0, c * tiles_per_core + t, 0)),
                pl.BlockSpec((sub, _LANES),
                             lambda c, t: (c * tiles_per_core + t, 0)),
                pl.BlockSpec((C, 1, _LANES), lambda c, t: (0, 0, 0)),
                pl.BlockSpec((C, 1, _LANES), lambda c, t: (0, 0, 0)),
            ],
            out_specs=pl.BlockSpec((_ACC_ROWS, _LANES), lambda c, t: (c, 0)),
        ),
        compiler_params=pltpu.CompilerParams(
            dimension_semantics=("parallel", "arbitrary"),
            vmem_limit_bytes=32 * 1024 * 1024),
        cost_estimate=pl.CostEstimate(
            flops=(10 * C + 30) * N,
            transcendentals=(2 * C + 1) * N,
            bytes_accessed=N * C * itemsize + 4 * N
            + 4 * num_cores * _ACC_ROWS * _LANES),
    )(logits_3d, labels_2d, idx_b, prior_b)

    # Final scalar combine (cross-lane sums, divisions, kp / puW) in plain JAX.
    parts = partials.reshape(num_cores, _ACC_ROWS, _LANES).sum(axis=(0, 2))
    pu3_sum, plab_sum, ce_sum, n_pos, n_unl = (parts[0], parts[1], parts[2],
                                               parts[3], parts[4])
    prior_sum = jnp.sum(priorlist.astype(jnp.float32))

    pu3 = pu3_sum / jnp.maximum(1.0, n_unl) / C
    # pu2 numerator == nP * sum(prior) - sum_{P rows}(prior[label] * p[label]).
    pu2 = (n_pos * prior_sum - plab_sum) / jnp.maximum(1.0, n_pos)
    pu_loss = pu3 + pu2
    crossloss = jnp.where(n_pos > 0.0, ce_sum / jnp.maximum(1.0, n_pos), 0.0)
    objective = pu_loss + kp * crossloss
    return objective, pu_loss * puW, crossloss


def _reference(outputs, labels, priorlist, indexlist, kp, puW, C):
    """Pure-JAX reference for validation (mirrors the PyTorch forward)."""
    outputs = outputs.astype(jnp.float32)
    p = jax.nn.softmax(outputs, axis=1)
    pos = labels <= C - 1
    nP = jnp.sum(pos)
    nU = jnp.sum(~pos)
    pu3 = jnp.sum(jnp.where(~pos[:, None], -jnp.log(1.0 - p) * indexlist, 0.0))
    pu3 = pu3 / jnp.maximum(1, nU) / C
    onehot = (jax.lax.broadcasted_iota(jnp.int32, outputs.shape, 1)
              == labels[:, None]).astype(jnp.float32)
    pu2 = jnp.sum(jnp.where(pos[:, None], -(p * onehot - 1.0) * priorlist, 0.0))
    pu2 = pu2 / jnp.maximum(1, nP)
    pu_loss = pu3 + pu2
    lse = jax.scipy.special.logsumexp(outputs, axis=1)
    ce_rows = lse - jnp.sum(outputs * onehot, axis=1)
    crossloss = jnp.where(nP > 0, jnp.sum(jnp.where(pos, ce_rows, 0.0))
                          / jnp.maximum(1, nP), 0.0)
    return pu_loss + kp * crossloss, pu_loss * puW, crossloss


if __name__ == "__main__":
    key = jax.random.PRNGKey(0)
    k1, k2, k3, k4 = jax.random.split(key, 4)

    # Case 1: tiny shape consistent with the module (batch=8, numClass=4).
    N, C = 8, 4
    outputs = jax.random.normal(k1, (N, C), dtype=jnp.float32)
    labels = jnp.array([0, 1, 2, 3, 4, 5, 6, 7], dtype=jnp.int32)  # half P, half U
    priorlist = jax.random.uniform(k2, (C,), dtype=jnp.float32, minval=0.05, maxval=0.3)
    indexlist = jnp.ones((C,), dtype=jnp.float32)
    kp, kn, puW = 0.5, 0.3, 2.0

    obj, pu_scaled, ce = nnpu_loss(outputs, labels, priorlist, indexlist, kp, kn,
                                   puW=puW, num_class=C)
    jax.block_until_ready((obj, pu_scaled, ce))
    r_obj, r_pu, r_ce = _reference(outputs, labels, priorlist, indexlist, kp, puW, C)
    assert jnp.allclose(obj, r_obj, rtol=5e-4, atol=1e-5)
    assert jnp.allclose(pu_scaled, r_pu, rtol=5e-4, atol=1e-5)
    assert jnp.allclose(ce, r_ce, rtol=5e-4, atol=1e-5)

    # Case 2: larger batch exercising padding, multiple row tiles and the
    # explicit 2-way core split of the leading "parallel" grid axis.
    N2 = 3000
    outputs2 = jax.random.normal(k3, (N2, C), dtype=jnp.float32)
    labels2 = jax.random.randint(k4, (N2,), 0, 2 * C, dtype=jnp.int32)
    obj2, pu2s, ce2 = nnpu_loss(outputs2, labels2, priorlist, indexlist, kp, kn,
                                puW=puW, num_class=C, tile_n=1024, num_cores=2)
    jax.block_until_ready((obj2, pu2s, ce2))
    r_obj2, r_pu2, r_ce2 = _reference(outputs2, labels2, priorlist, indexlist, kp, puW, C)
    assert jnp.allclose(obj2, r_obj2, rtol=5e-4, atol=1e-5)
    assert jnp.allclose(pu2s, r_pu2, rtol=5e-4, atol=1e-5)
    assert jnp.allclose(ce2, r_ce2, rtol=5e-4, atol=1e-5)

    # TODO(synk): the 'isic'/'chest' dataset branch (class weights loaded from a
    # text file + weighted CrossEntropyLoss) needs file I/O and is not implemented.
    print("KERNEL_OK")
</pallas_src>

<mosaic_0001>
module attributes {stable_mosaic.version = 11 : i64} {
  func.func @kernel(%arg0: i32, %arg1: i32, %arg2: memref<4x8x128xf32, #tpu.memory_space<vmem>>, %arg3: memref<8x128xi32, #tpu.memory_space<vmem>>, %arg4: memref<4x1x128xf32, #tpu.memory_space<vmem>>, %arg5: memref<4x1x128xf32, #tpu.memory_space<vmem>>, %arg6: memref<8x128xf32, #tpu.memory_space<vmem>>) attributes {dimension_semantics = [#tpu.dimension_semantics<parallel>, #tpu.dimension_semantics<arbitrary>], iteration_bounds = array<i64: 1, 1>, scalar_prefetch = 0 : i64, scratch_operands = 0 : i64, tpu.core_type = #tpu.core_type<tc>, window_params = [{transform_indices = @transform_0, window_bounds = array<i64: 4, 8, 128>}, {transform_indices = @transform_1, window_bounds = array<i64: 8, 128>}, {pipeline_mode = #tpu.pipeline_mode<synchronous>, transform_indices = @transform_2, window_bounds = array<i64: 4, 1, 128>}, {pipeline_mode = #tpu.pipeline_mode<synchronous>, transform_indices = @transform_3, window_bounds = array<i64: 4, 1, 128>}, {transform_indices = @transform_4, window_bounds = array<i64: 8, 128>}]} {
    %c0_i32 = arith.constant 0 : i32
    %0 = arith.cmpi eq, %arg1, %c0_i32 : i32
    %1 = arith.extui %0 : i1 to i32
    %c0_i32_0 = arith.constant 0 : i32
    %2 = arith.cmpi ne, %1, %c0_i32_0 : i32
    scf.if %2 {
      %cst_71 = arith.constant 0.000000e+00 : f32
      %156 = vector.broadcast %cst_71 : f32 to vector<8x128xf32>
      %c0_72 = arith.constant 0 : index
      %c0_73 = arith.constant 0 : index
      %157 = vector.load %arg6[%c0_72, %c0_73] : memref<8x128xf32, #tpu.memory_space<vmem>>, vector<8x128xf32>
      tpu.vector_store %arg6[%c0_72, %c0_73], %156 {strides = array<i32>} : memref<8x128xf32, #tpu.memory_space<vmem>>, vector<8x128xf32>,
    } else {
    }
    %c1_i32 = arith.constant 1 : i32
    %3 = arith.muli %arg0, %c1_i32 : i32
    %4 = arith.addi %3, %arg1 : i32
    %c1024_i32 = arith.constant 1024 : i32
    %5 = arith.muli %4, %c1024_i32 : i32
    %6 = tpu.iota {dimensions = array<i32: 0>} : vector<8x128xi32>
    %7 = tpu.iota {dimensions = array<i32: 1>} : vector<8x128xi32>
    %c128_i32 = arith.constant 128 : i32
    %8 = vector.broadcast %c128_i32 : i32 to vector<8x128xi32>
    %9 = arith.muli %6, %8 : vector<8x128xi32>
    %10 = vector.broadcast %5 : i32 to vector<8x128xi32>
    %11 = arith.addi %10, %9 : vector<8x128xi32>
    %12 = arith.addi %11, %7 : vector<8x128xi32>
    %c8_i32 = arith.constant 8 : i32
    %13 = vector.broadcast %c8_i32 : i32 to vector<8x128xi32>
    %14 = arith.cmpi slt, %12, %13 : vector<8x128xi32>
    %c0 = arith.constant 0 : index
    %c0_1 = arith.constant 0 : index
    %15 = vector.load %arg3[%c0, %c0_1] : memref<8x128xi32, #tpu.memory_space<vmem>>, vector<8x128xi32>
    %c3_i32 = arith.constant 3 : i32
    %16 = vector.broadcast %c3_i32 : i32 to vector<8x128xi32>
    %17 = arith.cmpi sle, %15, %16 : vector<8x128xi32>
    %18 = arith.andi %14, %17 : vector<8x128xi1>
    %c3_i32_2 = arith.constant 3 : i32
    %19 = vector.broadcast %c3_i32_2 : i32 to vector<8x128xi32>
    %20 = arith.cmpi sgt, %15, %19 : vector<8x128xi32>
    %21 = arith.andi %14, %20 : vector<8x128xi1>
    %c0_3 = arith.constant 0 : index
    %c0_4 = arith.constant 0 : index
    %c0_5 = arith.constant 0 : index
    %22 = vector.load %arg2[%c0_3, %c0_4, %c0_5] : memref<4x8x128xf32, #tpu.memory_space<vmem>>, vector<1x8x128xf32>
    %23 = vector.shape_cast %22 : vector<1x8x128xf32> to vector<8x128xf32>
    %c1 = arith.constant 1 : index
    %c0_6 = arith.constant 0 : index
    %c0_7 = arith.constant 0 : index
    %24 = vector.load %arg2[%c1, %c0_6, %c0_7] : memref<4x8x128xf32, #tpu.memory_space<vmem>>, vector<1x8x128xf32>
    %25 = vector.shape_cast %24 : vector<1x8x128xf32> to vector<8x128xf32>
    %c2 = arith.constant 2 : index
    %c0_8 = arith.constant 0 : index
    %c0_9 = arith.constant 0 : index
    %26 = vector.load %arg2[%c2, %c0_8, %c0_9] : memref<4x8x128xf32, #tpu.memory_space<vmem>>, vector<1x8x128xf32>
    %27 = vector.shape_cast %26 : vector<1x8x128xf32> to vector<8x128xf32>
    %c3 = arith.constant 3 : index
    %c0_10 = arith.constant 0 : index
    %c0_11 = arith.constant 0 : index
    %28 = vector.load %arg2[%c3, %c0_10, %c0_11] : memref<4x8x128xf32, #tpu.memory_space<vmem>>, vector<1x8x128xf32>
    %29 = vector.shape_cast %28 : vector<1x8x128xf32> to vector<8x128xf32>
    %30 = arith.maximumf %23, %25 : vector<8x128xf32>
    %31 = arith.maximumf %30, %27 : vector<8x128xf32>
    %32 = arith.maximumf %31, %29 : vector<8x128xf32>
    %33 = arith.subf %23, %32 : vector<8x128xf32>
    %34 = math.exp %33 : vector<8x128xf32>
    %35 = arith.subf %25, %32 : vector<8x128xf32>
    %36 = math.exp %35 : vector<8x128xf32>
    %37 = arith.subf %27, %32 : vector<8x128xf32>
    %38 = math.exp %37 : vector<8x128xf32>
    %39 = arith.subf %29, %32 : vector<8x128xf32>
    %40 = math.exp %39 : vector<8x128xf32>
    %41 = arith.addf %34, %36 : vector<8x128xf32>
    %42 = arith.addf %41, %38 : vector<8x128xf32>
    %43 = arith.addf %42, %40 : vector<8x128xf32>
    %44 = math.log %43 : vector<8x128xf32>
    %cst = arith.constant 0.000000e+00 : f32
    %45 = vector.broadcast %cst : f32 to vector<8x128xf32>
    %c0_12 = arith.constant 0 : index
    %c0_13 = arith.constant 0 : index
    %c0_14 = arith.constant 0 : index
    %46 = vector.load %arg4[%c0_12, %c0_13, %c0_14] : memref<4x1x128xf32, #tpu.memory_space<vmem>>, vector<1x1x128xf32>
    %47 = vector.shape_cast %46 : vector<1x1x128xf32> to vector<1x128xf32>
    %48 = arith.subf %43, %34 : vector<8x128xf32>
    %49 = math.log %48 : vector<8x128xf32>
    %50 = arith.subf %44, %49 : vector<8x128xf32>
    %51 = vector.broadcast %47 : vector<1x128xf32> to vector<8x128xf32>
    %52 = arith.mulf %51, %50 : vector<8x128xf32>
    %53 = arith.addf %45, %52 : vector<8x128xf32>
    %c1_15 = arith.constant 1 : index
    %c0_16 = arith.constant 0 : index
    %c0_17 = arith.constant 0 : index
    %54 = vector.load %arg4[%c1_15, %c0_16, %c0_17] : memref<4x1x128xf32, #tpu.memory_space<vmem>>, vector<1x1x128xf32>
    %55 = vector.shape_cast %54 : vector<1x1x128xf32> to vector<1x128xf32>
    %56 = arith.subf %43, %36 : vector<8x128xf32>
    %57 = math.log %56 : vector<8x128xf32>
    %58 = arith.subf %44, %57 : vector<8x128xf32>
    %59 = vector.broadcast %55 : vector<1x128xf32> to vector<8x128xf32>
    %60 = arith.mulf %59, %58 : vector<8x128xf32>
    %61 = arith.addf %53, %60 : vector<8x128xf32>
    %c2_18 = arith.constant 2 : index
    %c0_19 = arith.constant 0 : index
    %c0_20 = arith.constant 0 : index
    %62 = vector.load %arg4[%c2_18, %c0_19, %c0_20] : memref<4x1x128xf32, #tpu.memory_space<vmem>>, vector<1x1x128xf32>
    %63 = vector.shape_cast %62 : vector<1x1x128xf32> to vector<1x128xf32>
    %64 = arith.subf %43, %38 : vector<8x128xf32>
    %65 = math.log %64 : vector<8x128xf32>
    %66 = arith.subf %44, %65 : vector<8x128xf32>
    %67 = vector.broadcast %63 : vector<1x128xf32> to vector<8x128xf32>
    %68 = arith.mulf %67, %66 : vector<8x128xf32>
    %69 = arith.addf %61, %68 : vector<8x128xf32>
    %c3_21 = arith.constant 3 : index
    %c0_22 = arith.constant 0 : index
    %c0_23 = arith.constant 0 : index
    %70 = vector.load %arg4[%c3_21, %c0_22, %c0_23] : memref<4x1x128xf32, #tpu.memory_space<vmem>>, vector<1x1x128xf32>
    %71 = vector.shape_cast %70 : vector<1x1x128xf32> to vector<1x128xf32>
    %72 = arith.subf %43, %40 : vector<8x128xf32>
    %73 = math.log %72 : vector<8x128xf32>
    %74 = arith.subf %44, %73 : vector<8x128xf32>
    %75 = vector.broadcast %71 : vector<1x128xf32> to vector<8x128xf32>
    %76 = arith.mulf %75, %74 : vector<8x128xf32>
    %77 = arith.addf %69, %76 : vector<8x128xf32>
    %cst_24 = arith.constant 0.000000e+00 : f32
    %78 = vector.broadcast %cst_24 : f32 to vector<8x128xf32>
    %cst_25 = arith.constant 0.000000e+00 : f32
    %79 = vector.broadcast %cst_25 : f32 to vector<8x128xf32>
    %cst_26 = arith.constant 0.000000e+00 : f32
    %80 = vector.broadcast %cst_26 : f32 to vector<8x128xf32>
    %c0_i32_27 = arith.constant 0 : i32
    %81 = vector.broadcast %c0_i32_27 : i32 to vector<8x128xi32>
    %82 = arith.cmpi eq, %15, %81 : vector<8x128xi32>
    %83 = arith.select %82, %34, %78 : vector<8x128xi1>, vector<8x128xf32>
    %c0_28 = arith.constant 0 : index
    %c0_29 = arith.constant 0 : index
    %c0_30 = arith.constant 0 : index
    %84 = vector.load %arg5[%c0_28, %c0_29, %c0_30] : memref<4x1x128xf32, #tpu.memory_space<vmem>>, vector<1x1x128xf32>
    %85 = vector.shape_cast %84 : vector<1x1x128xf32> to vector<1x128xf32>
    %86 = vector.shape_cast %85 : vector<1x128xf32> to vector<1x128xf32>
    %87 = vector.broadcast %86 : vector<1x128xf32> to vector<8x128xf32>
    %88 = arith.select %82, %87, %79 : vector<8x128xi1>, vector<8x128xf32>
    %89 = arith.select %82, %23, %80 : vector<8x128xi1>, vector<8x128xf32>
    %c1_i32_31 = arith.constant 1 : i32
    %90 = vector.broadcast %c1_i32_31 : i32 to vector<8x128xi32>
    %91 = arith.cmpi eq, %15, %90 : vector<8x128xi32>
    %92 = arith.select %91, %36, %83 : vector<8x128xi1>, vector<8x128xf32>
    %c1_32 = arith.constant 1 : index
    %c0_33 = arith.constant 0 : index
    %c0_34 = arith.constant 0 : index
    %93 = vector.load %arg5[%c1_32, %c0_33, %c0_34] : memref<4x1x128xf32, #tpu.memory_space<vmem>>, vector<1x1x128xf32>
    %94 = vector.shape_cast %93 : vector<1x1x128xf32> to vector<1x128xf32>
    %95 = vector.shape_cast %94 : vector<1x128xf32> to vector<1x128xf32>
    %96 = vector.broadcast %95 : vector<1x128xf32> to vector<8x128xf32>
    %97 = arith.select %91, %96, %88 : vector<8x128xi1>, vector<8x128xf32>
    %98 = arith.select %91, %25, %89 : vector<8x128xi1>, vector<8x128xf32>
    %c2_i32 = arith.constant 2 : i32
    %99 = vector.broadcast %c2_i32 : i32 to vector<8x128xi32>
    %100 = arith.cmpi eq, %15, %99 : vector<8x128xi32>
    %101 = arith.select %100, %38, %92 : vector<8x128xi1>, vector<8x128xf32>
    %c2_35 = arith.constant 2 : index
    %c0_36 = arith.constant 0 : index
    %c0_37 = arith.constant 0 : index
    %102 = vector.load %arg5[%c2_35, %c0_36, %c0_37] : memref<4x1x128xf32, #tpu.memory_space<vmem>>, vector<1x1x128xf32>
    %103 = vector.shape_cast %102 : vector<1x1x128xf32> to vector<1x128xf32>
    %104 = vector.shape_cast %103 : vector<1x128xf32> to vector<1x128xf32>
    %105 = vector.broadcast %104 : vector<1x128xf32> to vector<8x128xf32>
    %106 = arith.select %100, %105, %97 : vector<8x128xi1>, vector<8x128xf32>
    %107 = arith.select %100, %27, %98 : vector<8x128xi1>, vector<8x128xf32>
    %c3_i32_38 = arith.constant 3 : i32
    %108 = vector.broadcast %c3_i32_38 : i32 to vector<8x128xi32>
    %109 = arith.cmpi eq, %15, %108 : vector<8x128xi32>
    %110 = arith.select %109, %40, %101 : vector<8x128xi1>, vector<8x128xf32>
    %c3_39 = arith.constant 3 : index
    %c0_40 = arith.constant 0 : index
    %c0_41 = arith.constant 0 : index
    %111 = vector.load %arg5[%c3_39, %c0_40, %c0_41] : memref<4x1x128xf32, #tpu.memory_space<vmem>>, vector<1x1x128xf32>
    %112 = vector.shape_cast %111 : vector<1x1x128xf32> to vector<1x128xf32>
    %113 = vector.shape_cast %112 : vector<1x128xf32> to vector<1x128xf32>
    %114 = vector.broadcast %113 : vector<1x128xf32> to vector<8x128xf32>
    %115 = arith.select %109, %114, %106 : vector<8x128xi1>, vector<8x128xf32>
    %116 = arith.select %109, %29, %107 : vector<8x128xi1>, vector<8x128xf32>
    %117 = arith.divf %110, %43 : vector<8x128xf32>
    %118 = arith.addf %32, %44 : vector<8x128xf32>
    %119 = arith.subf %118, %116 : vector<8x128xf32>
    %cst_42 = arith.constant 0.000000e+00 : f32
    %120 = vector.broadcast %cst_42 : f32 to vector<8x128xf32>
    %121 = arith.select %21, %77, %120 : vector<8x128xi1>, vector<8x128xf32>
    %122 = arith.mulf %115, %117 : vector<8x128xf32>
    %123 = arith.select %18, %122, %120 : vector<8x128xi1>, vector<8x128xf32>
    %124 = arith.select %18, %119, %120 : vector<8x128xi1>, vector<8x128xf32>
    %cst_43 = arith.constant 1.000000e+00 : f32
    %cst_44 = arith.constant 0.000000e+00 : f32
    %125 = vector.broadcast %cst_43 : f32 to vector<8x128xf32>
    %126 = vector.broadcast %cst_44 : f32 to vector<8x128xf32>
    %127 = arith.select %18, %125, %126 : vector<8x128xi1>, vector<8x128xf32>
    %cst_45 = arith.constant 1.000000e+00 : f32
    %cst_46 = arith.constant 0.000000e+00 : f32
    %128 = vector.broadcast %cst_45 : f32 to vector<8x128xf32>
    %129 = vector.broadcast %cst_46 : f32 to vector<8x128xf32>
    %130 = arith.select %21, %128, %129 : vector<8x128xi1>, vector<8x128xf32>
    %c0_47 = arith.constant 0 : index
    %c0_48 = arith.constant 0 : index
    %131 = vector.load %arg6[%c0_47, %c0_48] : memref<8x128xf32, #tpu.memory_space<vmem>>, vector<1x128xf32>
    %cst_49 = arith.constant dense<0.000000e+00> : vector<128xf32>
    %132 = vector.multi_reduction <add>, %121, %cst_49 [0] : vector<8x128xf32> to vector<128xf32>
    %133 = vector.shape_cast %132 : vector<128xf32> to vector<1x128xf32>
    %134 = arith.addf %131, %133 : vector<1x128xf32>
    %c0_50 = arith.constant 0 : index
    %c0_51 = arith.constant 0 : index
    %135 = vector.load %arg6[%c0_50, %c0_51] : memref<8x128xf32, #tpu.memory_space<vmem>>, vector<1x128xf32>
    tpu.vector_store %arg6[%c0_50, %c0_51], %134 {strides = array<i32>} : memref<8x128xf32, #tpu.memory_space<vmem>>, vector<1x128xf32>,
    %c1_52 = arith.constant 1 : index
    %c0_53 = arith.constant 0 : index
    %136 = vector.load %arg6[%c1_52, %c0_53] : memref<8x128xf32, #tpu.memory_space<vmem>>, vector<1x128xf32>
    %cst_54 = arith.constant dense<0.000000e+00> : vector<128xf32>
    %137 = vector.multi_reduction <add>, %123, %cst_54 [0] : vector<8x128xf32> to vector<128xf32>
    %138 = vector.shape_cast %137 : vector<128xf32> to vector<1x128xf32>
    %139 = arith.addf %136, %138 : vector<1x128xf32>
    %c1_55 = arith.constant 1 : index
    %c0_56 = arith.constant 0 : index
    %140 = vector.load %arg6[%c1_55, %c0_56] : memref<8x128xf32, #tpu.memory_space<vmem>>, vector<1x128xf32>
    tpu.vector_store %arg6[%c1_55, %c0_56], %139 {strides = array<i32>} : memref<8x128xf32, #tpu.memory_space<vmem>>, vector<1x128xf32>,
    %c2_57 = arith.constant 2 : index
    %c0_58 = arith.constant 0 : index
    %141 = vector.load %arg6[%c2_57, %c0_58] : memref<8x128xf32, #tpu.memory_space<vmem>>, vector<1x128xf32>
    %cst_59 = arith.constant dense<0.000000e+00> : vector<128xf32>
    %142 = vector.multi_reduction <add>, %124, %cst_59 [0] : vector<8x128xf32> to vector<128xf32>
    %143 = vector.shape_cast %142 : vector<128xf32> to vector<1x128xf32>
    %144 = arith.addf %141, %143 : vector<1x128xf32>
    %c2_60 = arith.constant 2 : index
    %c0_61 = arith.constant 0 : index
    %145 = vector.load %arg6[%c2_60, %c0_61] : memref<8x128xf32, #tpu.memory_space<vmem>>, vector<1x128xf32>
    tpu.vector_store %arg6[%c2_60, %c0_61], %144 {strides = array<i32>} : memref<8x128xf32, #tpu.memory_space<vmem>>, vector<1x128xf32>,
    %c3_62 = arith.constant 3 : index
    %c0_63 = arith.constant 0 : index
    %146 = vector.load %arg6[%c3_62, %c0_63] : memref<8x128xf32, #tpu.memory_space<vmem>>, vector<1x128xf32>
    %cst_64 = arith.constant dense<0.000000e+00> : vector<128xf32>
    %147 = vector.multi_reduction <add>, %127, %cst_64 [0] : vector<8x128xf32> to vector<128xf32>
    %148 = vector.shape_cast %147 : vector<128xf32> to vector<1x128xf32>
    %149 = arith.addf %146, %148 : vector<1x128xf32>
    %c3_65 = arith.constant 3 : index
    %c0_66 = arith.constant 0 : index
    %150 = vector.load %arg6[%c3_65, %c0_66] : memref<8x128xf32, #tpu.memory_space<vmem>>, vector<1x128xf32>
    tpu.vector_store %arg6[%c3_65, %c0_66], %149 {strides = array<i32>} : memref<8x128xf32, #tpu.memory_space<vmem>>, vector<1x128xf32>,
    %c4 = arith.constant 4 : index
    %c0_67 = arith.constant 0 : index
    %151 = vector.load %arg6[%c4, %c0_67] : memref<8x128xf32, #tpu.memory_space<vmem>>, vector<1x128xf32>
    %cst_68 = arith.constant dense<0.000000e+00> : vector<128xf32>
    %152 = vector.multi_reduction <add>, %130, %cst_68 [0] : vector<8x128xf32> to vector<128xf32>
    %153 = vector.shape_cast %152 : vector<128xf32> to vector<1x128xf32>
    %154 = arith.addf %151, %153 : vector<1x128xf32>
    %c4_69 = arith.constant 4 : index
    %c0_70 = arith.constant 0 : index
    %155 = vector.load %arg6[%c4_69, %c0_70] : memref<8x128xf32, #tpu.memory_space<vmem>>, vector<1x128xf32>
    tpu.vector_store %arg6[%c4_69, %c0_70], %154 {strides = array<i32>} : memref<8x128xf32, #tpu.memory_space<vmem>>, vector<1x128xf32>,
    return
  }
  func.func @transform_0(%arg0: i32, %arg1: i32) -> (i32, i32, i32) {
    %c1_i32 = arith.constant 1 : i32
    %0 = arith.muli %arg0, %c1_i32 : i32
    %1 = arith.addi %0, %arg1 : i32
    %c0_i32 = arith.constant 0 : i32
    %c0_i32_0 = arith.constant 0 : i32
    %c0_i32_1 = arith.constant 0 : i32
    return %c0_i32, %1, %c0_i32_0 : i32, i32, i32
  }
  func.func @transform_1(%arg0: i32, %arg1: i32) -> (i32, i32) {
    %c1_i32 = arith.constant 1 : i32
    %0 = arith.muli %arg0, %c1_i32 : i32
    %1 = arith.addi %0, %arg1 : i32
    %c0_i32 = arith.constant 0 : i32
    %c0_i32_0 = arith.constant 0 : i32
    return %1, %c0_i32 : i32, i32
  }
  func.func @transform_2(%arg0: i32, %arg1: i32) -> (i32, i32, i32) {
    %c0_i32 = arith.constant 0 : i32
    %c0_i32_0 = arith.constant 0 : i32
    %c0_i32_1 = arith.constant 0 : i32
    %c0_i32_2 = arith.constant 0 : i32
    return %c0_i32, %c0_i32_0, %c0_i32_1 : i32, i32, i32
  }
  func.func @transform_3(%arg0: i32, %arg1: i32) -> (i32, i32, i32) {
    %c0_i32 = arith.constant 0 : i32
    %c0_i32_0 = arith.constant 0 : i32
    %c0_i32_1 = arith.constant 0 : i32
    %c0_i32_2 = arith.constant 0 : i32
    return %c0_i32, %c0_i32_0, %c0_i32_1 : i32, i32, i32
  }
  func.func @transform_4(%arg0: i32, %arg1: i32) -> (i32, i32) {
    %c0_i32 = arith.constant 0 : i32
    %c0_i32_0 = arith.constant 0 : i32
    return %arg0, %c0_i32 : i32, i32
  }
}

</mosaic_0001>

<bundles_post_ra>
// kernel: tpu_custom_call.1
= control target key start
LH: loop header
LB: loop body
LE: loop exit
PB: predicated region body
PF: predicated region fallthrough
CT: control target
= control target key end

     0   :  { %9 = vsyncpa [#allocation3], 0  ;;  %s529_s0 = inlined_call_operand.hbm [shape: f32[4,8,128], index: 0, kind: input, shape index: {}]   ;;  %s530_s1 = inlined_call_operand.hbm [shape: s32[8,128], index: 1, kind: input, shape index: {}]   ;;  %s531_s2 = inlined_call_operand.hbm [shape: f32[4,1,128], index: 2, kind: input, shape index: {}]   ;;  %s532_s3 = inlined_call_operand.vmem [shape: f32[4,1,128], index: 3, kind: input, shape index: {}]   ;;  %s533_s4 = inlined_call_operand.hbm [shape: f32[8,128], index: 4, kind: output, shape index: {}]  }
   0x1   :  { %10 = vsyncpa [#allocation6], 0 }
   0x2   :  { %11 = vsyncpa [#allocation4], 0  ;;  %s412_s15 = smov [#allocation5]   ;;  %s413_s17 = smov [#allocation2]  }
   0x3   :  { %s36_s16 = sshll.u32 %s412_s15, 4  ;;  %s20_s18 = sshll.u32 %s413_s17, 4  ;;  %s37_s16 = int_to_ptr.vmem [resolvable:$true] %s36_s16  ;;  %s21_s18 = int_to_ptr.vmem [resolvable:$true] %s20_s18 }
   0x4   :  { %s334_s19 = scalar_lea.vmem %s37_s16, 128  ;;  %p339_p1 = scmp.lt.s32.totalorder %s37_s16, %s37_s16 }
   0x5   :  { %p335_p0 = scmp.ne.s32.totalorder %s37_s16, %s334_s19  ;;  %p340_p2 = scmp.lt.s32.totalorder %s334_s19, %s334_s19 }
   0x7   :  { %p341_p3 = por %p340_p2, %p339_p1 }
   0x9   :  { %p342_p4 = pnand %p341_p3, %p335_p0 }
   0xb   :  { %345 = shalt.err (!%p342_p4)
}
   0xc   :  { %39 = dma.hbm_to_vmem [thread:$0]  %s530_s1, 128, %s37_s16, [#allocation6]  }
   0xd   :  { %s354_s22 = scalar_lea.vmem %s21_s18, 512  ;;  %p359_p6 = scmp.lt.s32.totalorder %s21_s18, %s21_s18 }
   0xe   :  { %p355_p5 = scmp.ne.s32.totalorder %s21_s18, %s354_s22  ;;  %p360_p7 = scmp.lt.s32.totalorder %s354_s22, %s354_s22 }
  0x10   :  { %p361_p8 = por %p360_p7, %p359_p6 }
  0x12   :  { %p362_p9 = pnand %p361_p8, %p355_p5 }
  0x14   :  { %365 = shalt.err (!%p362_p9)
}
  0x15   :  { %s414_s23 = smov 128   ;;  %s415_s24 = smov 8  }
  0x16   :  { %26 = dma.hbm_to_vmem [thread:$0]  %s529_s0, 512, %s21_s18, [#allocation3], %s414_s23, %s414_s23, %s415_s24  }
  0x17   :  { %s416_s27 = smov [#allocation7]  }
  0x18   :  { %s45_s28 = sshll.u32 %s416_s27, 4  ;;  %s46_s28 = int_to_ptr.vmem [resolvable:$true] %s45_s28 }
  0x19   :  { %s374_s29 = scalar_lea.vmem %s46_s28, 64  ;;  %p379_p11 = scmp.lt.s32.totalorder %s46_s28, %s46_s28 }
  0x1a   :  { %p375_p10 = scmp.ne.s32.totalorder %s46_s28, %s374_s29  ;;  %p380_p12 = scmp.lt.s32.totalorder %s374_s29, %s374_s29 }
  0x1c   :  { %p381_p13 = por %p380_p12, %p379_p11 }
  0x1e   :  { %p382_p0 = pnand %p381_p13, %p375_p10 }
  0x20   :  { %385 = shalt.err (!%p382_p0)
}
  0x21   :  { %s417_s1 = smov 16   ;;  %s418_s30 = smov 1  }
  0x22   :  { %51 = dma.hbm_to_vmem [thread:$0]  %s531_s2, 64, %s46_s28, [#allocation6], %s417_s1, %s417_s1, %s418_s30  }
  0x23   :  { %406 = dma.done.wait [#allocation3], 512  }
  0x24   :  { %407 = vsyncadd [#allocation3], 4294966784 }
  0x25   :  { %408 = dma.done.wait [#allocation6], 192  }
  0x26   :  { %409 = vsyncadd [#allocation6], 4294967104  ;;  %v72_v0 = vlaneseq  ;;  %v419_v1 = vmov 0.0   ;;  %v455_v6 = vld [vmem:[#allocation5] sm:$0xff]  ;;  %v459_v8 = vld [vmem:[#allocation2 + $0x8] sm:$0xff] }
  0x27   :  { %69 = vst [vmem:[#allocation8] sm:$0xff] %v419_v1  ;;  %v457_v7 = vld [vmem:[#allocation2] sm:$0xff]  ;;  %vm82_vm1 = vcmp.le.s32.totalorder %v455_v6, 3  ;;  %vm84_vm2 = vcmp.gt.s32.totalorder %v455_v6, 3  ;;  %v463_v9 = vld [vmem:[#allocation2 + $0x10] sm:$0xff]  ;;  %v471_v12 = vld [vmem:[#allocation2 + $0x18] sm:$0xff] }
  0x28   :  { %v73_v2 = vshrl.u32 %v72_v0, 7  ;;  %v75_v3 = vand.u32 127, %v72_v0  ;;  %v93_v10 = vmax.f32 %v457_v7, %v459_v8  ;;  %vm168_vm5 = vcmp.eq.s32.totalorder %v455_v6, 0  ;;  %v290_v53 = vld [vmem:[%s532_s3] ss:$0 sm:$0xff] }
  0x29   :  { %vm179_vm6 = vcmp.eq.s32.totalorder %v455_v6, 1  ;;  %v177_v55 = vsel %vm168_vm5, %v290_v53, 0.0  ;;  %v292_v56 = vld [vmem:[%s532_s3 + $0x1] ss:$0 sm:$0xff]  ;;  %v178_v57 = vsel %vm168_vm5, %v457_v7, 0.0  ;;  %vm191_vm7 = vcmp.eq.s32.totalorder %v455_v6, 2 }
  0x2a   :  { %v76_v4 = vmul.u32 128, %v73_v2  ;;  %v94_v14 = vmax.f32 %v93_v10, %v463_v9  ;;  %v189_v59 = vsel %vm179_vm6, %v292_v56, %v177_v55  ;;  %v294_v60 = vld [vmem:[%s532_s3 + $0x2] ss:$0 sm:$0xff]  ;;  %v190_v61 = vsel %vm179_vm6, %v459_v8, %v178_v57  ;;  %v296_v0 = vld [vmem:[%s532_s3 + $0x3] ss:$0 sm:$0xff]  ;;  %s420_s3 = smov [#allocation8]  }
  0x2b   :  { %vm203_vm8 = vcmp.eq.s32.totalorder %v455_v6, 3  ;;  %v201_v63 = vsel %vm191_vm7, %v294_v60, %v189_v59  ;;  %s276_s13 = sshll.u32 %s420_s3, 4  ;;  %s277_s13 = int_to_ptr.vmem [resolvable:$true] %s276_s13 }
  0x2c   :  { %v79_v5 = vadd.s32 %v76_v4, %v75_v3  ;;  %v479_v15 = vmax.f32 %v94_v14, %v471_v12  ;;  %s386_s14 = scalar_lea.vmem %s277_s13, 128  ;;  %p391_p2 = scmp.lt.s32.totalorder %s277_s13, %s277_s13 }
  0x2d   :  { %p387_p1 = scmp.ne.s32.totalorder %s277_s13, %s386_s14  ;;  %p392_p3 = scmp.lt.s32.totalorder %s386_s14, %s386_s14 }
  0x2e   :  { %vm80_vm0 = vcmp.lt.s32.totalorder %v79_v5, 8  ;;  %v96_v18 = vsub.f32 %v457_v7, %v479_v15  ;;  %v99_v19 = vsub.f32 %v459_v8, %v479_v15  ;;  %v102_v20 = vsub.f32 %v463_v9, %v479_v15  ;;  %v252_v36 = vld [vmem:[#allocation8 + $0x3] sm:$0x1]  ;;  %v261_v37 = vld [vmem:[#allocation8 + $0x4] sm:$0x1] }
  0x2f   :  { %vm467_vm3 = vmand %vm80_vm0, %vm82_vm1  ;;  %v105_v21 = vsub.f32 %v471_v12, %v479_v15  ;;  %v213_v7 = vsel %vm203_vm8, %v296_v0, %v201_v63  ;;  %v225_v60 = vld [vmem:[#allocation8] sm:$0x1]  ;;  %p393_p4 = por %p392_p3, %p391_p2 }
  0x30   :  { %vm473_vm4 = vmand %vm80_vm0, %vm84_vm2  ;;  %v223_v16 = vsel %vm467_vm3, 1.0, %v419_v1  ;;  %v97_v24 = vmul.f32 1.442695, %v96_v18  ;;  %v100_v25 = vmul.f32 1.442695, %v99_v19 }
  0x31   :  { %v224_v17 = vsel %vm473_vm4, 1.0, %v419_v1  ;;  %v253_v22 = vrot.slane %v223_v16, 4  ;;  %v103_v26 = vmul.f32 1.442695, %v102_v20  ;;  %v106_v27 = vmul.f32 1.442695, %v105_v21  ;;  %p394_p5 = pnand %p393_p4, %p387_p1 }
  0x32   :  { %v262_v23 = vrot.slane %v224_v17, 4  ;;  %306 = vpow2.f32 %v97_v24  ;;  %v202_v1 = vsel %vm191_vm7, %v463_v9, %v190_v61  ;;  %v286_v19 = vld [vmem:[#allocation7] ss:$0 sm:$0xff]  ;;  %v287_v9 = vld [vmem:[#allocation7 + $0x1] ss:$0 sm:$0xff] }
  0x33   :  { %v254_v28 = vadd.f32 %v253_v22, %v223_v16  ;;  %308 = vpow2.f32 %v100_v25  ;;  %v214_v14 = vsel %vm203_vm8, %v471_v12, %v202_v1 }
  0x34   :  { %v263_v29 = vadd.f32 %v262_v23, %v224_v17  ;;  %310 = vpow2.f32 %v103_v26 }
  0x35   :  { %v255_v30 = vrot.slane %v254_v28, 2  ;;  %312 = vpow2.f32 %v106_v27  ;;  %v288_v27 = vld [vmem:[#allocation7 + $0x2] ss:$0 sm:$0xff] }
  0x36   :  { %v264_v31 = vrot.slane %v263_v29, 2 }
  0x37   :  { %v256_v32 = vadd.f32 %v255_v30, %v254_v28 }
  0x38   :  { %v265_v33 = vadd.f32 %v264_v31, %v263_v29  ;;  %v289_v31 = vld [vmem:[#allocation7 + $0x3] ss:$0 sm:$0xff] }
  0x39   :  { %v257_v34 = vrot.slane %v256_v32, 1 }
  0x3a   :  { %v266_v35 = vrot.slane %v265_v33, 1 }
  0x3b   :  { %v258_v38 = vadd.f32 %v257_v34, %v256_v32 }
  0x3c   :  { %v267_v39 = vadd.f32 %v266_v35, %v265_v33 }
  0x3d   :  { %v259_v40 = vadd.f32 %v258_v38, %v252_v36 }
  0x3e   :  { %v268_v41 = vadd.f32 %v267_v39, %v261_v37 }
  0x3f   :  { %260 = vst [vmem:[#allocation8 + $0x3] sm:$0x1] %v259_v40  ;;  %v307_v42 = vpop.eup %306 }
  0x40   :  { %269 = vst [vmem:[#allocation8 + $0x4] sm:$0x1] %v268_v41  ;;  %v309_v43 = vpop.eup %308  ;;  %v169_v54 = vsel %vm168_vm5, %v307_v42, 0.0 }
  0x41   :  { %v311_v44 = vpop.eup %310  ;;  %v108_v45 = vadd.f32 %v309_v43, %v307_v42  ;;  %v180_v58 = vsel %vm179_vm6, %v309_v43, %v169_v54 }
  0x42   :  { %v313_v46 = vpop.eup %312  ;;  %v192_v62 = vsel %vm191_vm7, %v311_v44, %v180_v58 }
  0x43   :  { %v109_v47 = vadd.f32 %v311_v44, %v108_v45  ;;  %v204_v2 = vsel %vm203_vm8, %v313_v46, %v192_v62 }
  0x45   :  { %v110_v48 = vadd.f32 %v313_v46, %v109_v47 }
  0x47   :  { %314 = vlog2.f32 %v110_v48  ;;  %v114_v49 = vsub.f32 %v110_v48, %v307_v42  ;;  %v128_v50 = vsub.f32 %v110_v48, %v309_v43  ;;  %v142_v51 = vsub.f32 %v110_v48, %v311_v44 }
  0x48   :  { %v156_v52 = vsub.f32 %v110_v48, %v313_v46  ;;  %316 = vrcp.f32 %v110_v48  ;;  %v234_v48 = vld [vmem:[#allocation8 + $0x1] sm:$0x1] }
  0x49   :  { %318 = vlog2.f32 %v114_v49 }
  0x4a   :  { %320 = vlog2.f32 %v128_v50 }
  0x4b   :  { %322 = vlog2.f32 %v142_v51 }
  0x4c   :  { %324 = vlog2.f32 %v156_v52  ;;  %v243_v52 = vld [vmem:[#allocation8 + $0x2] sm:$0x1] }
  0x54   :  { %v315_v3 = vpop.eup %314 }
  0x55   :  { %v317_v4 = vpop.eup %316  ;;  %v112_v5 = vmul.f32 0.6931472, %v315_v3 }
  0x56   :  { %v319_v10 = vpop.eup %318  ;;  %v216_v16 = vmul.f32 %v317_v4, %v204_v2 }
  0x57   :  { %v321_v8 = vpop.eup %320  ;;  %v116_v17 = vmul.f32 0.6931472, %v319_v10  ;;  %v217_v6 = vadd.f32 %v112_v5, %v479_v15 }
  0x58   :  { %v323_v18 = vpop.eup %322  ;;  %v130_v20 = vmul.f32 0.6931472, %v321_v8  ;;  %v220_v21 = vmul.f32 %v216_v16, %v213_v7 }
  0x59   :  { %v325_v22 = vpop.eup %324  ;;  %v117_v23 = vsub.f32 %v112_v5, %v116_v17  ;;  %v144_v24 = vmul.f32 0.6931472, %v323_v18  ;;  %v218_v25 = vsub.f32 %v217_v6, %v214_v14 }
  0x5a   :  { %v131_v26 = vsub.f32 %v112_v5, %v130_v20  ;;  %v158_v28 = vmul.f32 0.6931472, %v325_v22  ;;  %v221_v12 = vsel %vm467_vm3, %v220_v21, 0.0 }
  0x5b   :  { %v124_v29 = vmul.f32 %v286_v19, %v117_v23  ;;  %v145_v30 = vsub.f32 %v112_v5, %v144_v24  ;;  %v222_v15 = vsel %vm467_vm3, %v218_v25, 0.0  ;;  %v235_v32 = vrot.slane %v221_v12, 4 }
  0x5c   :  { %v138_v33 = vmul.f32 %v287_v9, %v131_v26  ;;  %v159_v34 = vsub.f32 %v112_v5, %v158_v28  ;;  %v244_v35 = vrot.slane %v222_v15, 4 }
  0x5d   :  { %v152_v36 = vmul.f32 %v288_v27, %v145_v30  ;;  %v236_v37 = vadd.f32 %v235_v32, %v221_v12 }
  0x5e   :  { %v139_v38 = vadd.f32 %v138_v33, %v124_v29  ;;  %v166_v39 = vmul.f32 %v289_v31, %v159_v34  ;;  %v245_v40 = vadd.f32 %v244_v35, %v222_v15 }
  0x5f   :  { %v237_v41 = vrot.slane %v236_v37, 2 }
  0x60   :  { %v153_v42 = vadd.f32 %v152_v36, %v139_v38  ;;  %v246_v43 = vrot.slane %v245_v40, 2 }
  0x61   :  { %v238_v44 = vadd.f32 %v237_v41, %v236_v37 }
  0x62   :  { %v167_v45 = vadd.f32 %v166_v39, %v153_v42  ;;  %v247_v46 = vadd.f32 %v246_v43, %v245_v40 }
  0x63   :  { %v239_v47 = vrot.slane %v238_v44, 1 }
  0x64   :  { %v219_v11 = vsel %vm473_vm4, %v167_v45, 0.0  ;;  %v248_v49 = vrot.slane %v247_v46, 1 }
  0x65   :  { %v226_v50 = vrot.slane %v219_v11, 4  ;;  %v240_v51 = vadd.f32 %v239_v47, %v238_v44 }
  0x66   :  { %v249_v53 = vadd.f32 %v248_v49, %v247_v46 }
  0x67   :  { %v227_v54 = vadd.f32 %v226_v50, %v219_v11  ;;  %v241_v55 = vadd.f32 %v240_v51, %v234_v48 }
  0x68   :  { %v250_v56 = vadd.f32 %v249_v53, %v243_v52 }
  0x69   :  { %v228_v57 = vrot.slane %v227_v54, 2  ;;  %242 = vst [vmem:[#allocation8 + $0x1] sm:$0x1] %v241_v55 }
  0x6a   :  { %251 = vst [vmem:[#allocation8 + $0x2] sm:$0x1] %v250_v56 }
  0x6b   :  { %v229_v58 = vadd.f32 %v228_v57, %v227_v54 }
  0x6d   :  { %v230_v59 = vrot.slane %v229_v58, 1 }
  0x6f   :  { %v231_v61 = vadd.f32 %v230_v59, %v229_v58 }
  0x71   :  { %v232_v13 = vadd.f32 %v231_v61, %v225_v60 }
  0x73   :  { %233 = vst [vmem:[#allocation8] sm:$0x1] %v232_v13 }
  0x74   :  { %397 = shalt.err (!%p394_p5)
}
  0x75   :  { %279 = dma.vmem_to_hbm [thread:$0]  %s277_s13, 128, %s533_s4, [#allocation4]  }
  0x76   :  { %410 = dma.done.wait [#allocation4], 128  }
  0x77   :  { %411 = vsyncadd [#allocation4], 4294967168 }
  0x78   :  { %283 = vsyncpa [#allocation3], 1 }
  0x79   :  { %284 = vsyncpa [#allocation6], 1 }
  0x7a   :  { %285 = vsyncpa [#allocation4], 1 }

</bundles_post_ra>
